<compile_context>
chip_gen: v7x
topology: tpu7x:2x2x1
jax: 0.10.0
libtpu: 0.0.40
codegen_flags: <defaults>
</compile_context>

<pallas_src>
import math

import jax
import jax.numpy as jnp
from jax.experimental import pallas as pl
from jax.experimental.pallas import tpu as pltpu

# ---- ConvBlock configuration -------------------------------------------------
N = 2             # batch
X_DIM = 16        # sequence length (x_dim)
CH_DIM = 4        # input channels (ch_dim)
N_FILTERS = 8     # Conv1d out channels
KERNEL_SIZE = 3
POOL_SIZE = 2
BN_EPS = 1e-5

KC = KERNEL_SIZE * CH_DIM          # 12  (im2col contraction size)
L_OUT = X_DIM // POOL_SIZE         # 8   (MaxPool1d pad P = 0 for this config)
NP = N * X_DIM                     # 32  (all positions, batches concat on lanes)
NPO = N * L_OUT                    # 16

_HIGHEST = jax.lax.Precision.HIGHEST


def _shift_lanes_left(v):
    # v[:, l] -> v[:, l+1], wrapping the first column into the last lane.
    return jnp.concatenate([v[:, 1:], v[:, :1]], axis=1)


def _shift_lanes_right(v):
    # v[:, l] -> v[:, l-1], wrapping the last column into the first lane.
    return jnp.concatenate([v[:, -1:], v[:, :-1]], axis=1)


def convblock_kernel(x_ref, p_ref, o_ref):
    # x_ref: (N, CH_DIM, X_DIM)       raw NCL input (no wrapper pad/transpose)
    # p_ref: (N_FILTERS, KC + 2)      [ conv weight (F,KC) | gamma | beta ]
    # o_ref: (N, N_FILTERS, L_OUT)    NCL output

    # 1) Activation (GELU, tanh approx), batches concatenated along lanes -> (C, N*L).
    x_all = jnp.concatenate([x_ref[n] for n in range(N)], axis=1)
    xg = jax.nn.gelu(x_all.astype(jnp.float32), approximate=True)

    # 2) im2col for the 3-tap 'same' conv: wrap-style lane shifts (no zero-column
    #    vreg), with jnp.where masks zeroing each per-batch boundary lane (this is
    #    the explicit zero padding AFTER activation, and it also kills the
    #    wrapped/cross-batch lanes brought in by the shift).
    lane = jax.lax.broadcasted_iota(jnp.int32, (CH_DIM, NP), 1)
    pos = lane % X_DIM                                    # position within each batch
    prev = jnp.where(pos == 0, 0.0, _shift_lanes_right(xg))        # x[l-1]
    nxt = jnp.where(pos == X_DIM - 1, 0.0, _shift_lanes_left(xg))  # x[l+1]
    a = jnp.concatenate([prev, xg, nxt], axis=0)          # (KC, N*L) = (12, 32)

    # 3) Conv1d(k=3, stride=1, dilation=1, 'same', bias=False) as ONE MXU matmul,
    #    full-f32 precision to match PyTorch's f32 Conv1d.
    p = p_ref[...]
    w2 = p[:, :KC]                                        # (F, KC)
    gamma = p[:, KC:KC + 1]                               # (F, 1)
    beta = p[:, KC + 1:KC + 2]                            # (F, 1)
    conv = jnp.dot(w2, a, preferred_element_type=jnp.float32,
                   precision=_HIGHEST)                    # (F, N*L) = (8, 32)

    # 4) BatchNorm1d, training-mode forward (biased batch stats over N*L per
    #    channel), folded into a per-channel scale/shift FMA.  Both reductions
    #    (sum x, sum x^2) merged into ONE cross-lane reduce over a (2F, N*L)
    #    sublane stack.  One-pass variance clamped >= 0.
    stacked = jnp.concatenate([conv, conv * conv], axis=0)          # (2F, NP)
    sums = jnp.sum(stacked, axis=1, keepdims=True) * (1.0 / NP)     # (2F, 1)
    mean = sums[:N_FILTERS]                               # (F, 1)
    meansq = sums[N_FILTERS:]                             # (F, 1)
    var = jnp.maximum(meansq - mean * mean, 0.0)
    scale = gamma * jax.lax.rsqrt(var + BN_EPS)           # (F, 1)
    shift = beta - mean * scale                           # (F, 1)
    y = conv * scale + shift                              # (F, N*L)

    # 5) MaxPool1d(kernel=2, stride=2, pad=0): pairwise max via ONE lane shift
    #    (VPU/copy work), then ONE even-position selection matmul on the
    #    otherwise-idle MXU.  y_max[:, 2m] = max(y[:,2m], y[:,2m+1]); the wrapped
    #    value in lane NP-1 (odd) is never selected, so no mask is needed.
    y_max = jnp.maximum(y, _shift_lanes_left(y))
    row = jax.lax.broadcasted_iota(jnp.int32, (NP, NPO), 0)
    col = jax.lax.broadcasted_iota(jnp.int32, (NP, NPO), 1)
    s_even = (row == 2 * col).astype(jnp.float32)         # picks y_max[:, 2m]
    pooled = jnp.dot(y_max, s_even, preferred_element_type=jnp.float32,
                     precision=_HIGHEST)                  # (F, N*L_OUT)

    # 6) Store directly in NCL order: pooled[:, n*L_OUT : (n+1)*L_OUT] is batch n.
    for n in range(N):
        o_ref[n] = pooled[:, n * L_OUT:(n + 1) * L_OUT]

    # TODO(synk): dropout (p=0) and the residual 1x1-conv branch are disabled by
    # this config; BatchNorm running-stat updates (stateful) are not modeled.


def pack_params(w_torch, gamma, beta):
    """One-time parameter packing (outside the jitted forward).

    torch Conv1d weight (Cout, Cin, K) -> (Cout, K*Cin) with column = k*Cin + c,
    then gamma/beta appended as two extra columns -> a single (F, KC+2) DMA.
    """
    w2 = jnp.transpose(w_torch, (0, 2, 1)).reshape(N_FILTERS, KC)
    return jnp.concatenate(
        [w2, gamma.reshape(N_FILTERS, 1), beta.reshape(N_FILTERS, 1)],
        axis=1).astype(jnp.float32)


# Advisory cost hint so XLA can overlap neighbors when this op sits in a model.
_COST = pl.CostEstimate(
    flops=2 * N_FILTERS * KC * NP + 2 * N_FILTERS * NP * NPO,   # conv + pool dots
    transcendentals=CH_DIM * NP + N_FILTERS,                    # tanh (GELU) + rsqrt
    bytes_accessed=(N * CH_DIM * X_DIM + N_FILTERS * (KC + 2)
                    + N * N_FILTERS * L_OUT) * 4,
)


@jax.jit
def conv_block(x_ncl, params):
    """x_ncl: (N, CH_DIM, X_DIM) PyTorch NCL layout. Returns (N, N_FILTERS, L_OUT)."""
    return pl.pallas_call(
        convblock_kernel,
        out_shape=jax.ShapeDtypeStruct((N, N_FILTERS, L_OUT), jnp.float32),
        in_specs=[pl.BlockSpec(memory_space=pltpu.MemorySpace.VMEM)] * 2,
        out_specs=pl.BlockSpec(memory_space=pltpu.MemorySpace.VMEM),
        cost_estimate=_COST,
    )(x_ncl.astype(jnp.float32), params)


if __name__ == "__main__":
    key = jax.random.PRNGKey(0)
    kx, kw = jax.random.split(key)

    # Input, PyTorch NCL layout: (batch, ch_dim, x_dim)
    x = jax.random.normal(kx, (N, CH_DIM, X_DIM), jnp.float32)

    # Deterministic parameter init mirroring the module's __init__:
    #   kaiming_normal_(conv.weight, mode='fan_out') -> std = sqrt(2 / (Cout*K))
    std = math.sqrt(2.0 / (N_FILTERS * KERNEL_SIZE))
    w_torch = std * jax.random.normal(kw, (N_FILTERS, CH_DIM, KERNEL_SIZE), jnp.float32)
    gamma = jnp.ones((N_FILTERS,), jnp.float32)    # residual=False -> init.ones_
    beta = jnp.zeros((N_FILTERS,), jnp.float32)    # BatchNorm bias default

    params = pack_params(w_torch, gamma, beta)     # weight packing done once
    out = conv_block(x, params)
    jax.block_until_ready(out)
    assert out.shape == (N, N_FILTERS, L_OUT)
    assert out.dtype == jnp.float32
    print("KERNEL_OK")
</pallas_src>

<mosaic_0001>
module attributes {stable_mosaic.version = 11 : i64} {
  func.func @convblock_kernel(%arg0: memref<2x4x16xf32, #tpu.memory_space<vmem>>, %arg1: memref<8x14xf32, #tpu.memory_space<vmem>>, %arg2: memref<2x8x8xf32, #tpu.memory_space<vmem>>) attributes {dimension_semantics = [], scalar_prefetch = 0 : i64, scratch_operands = 0 : i64, tpu.core_type = #tpu.core_type<tc>} {
    %c0 = arith.constant 0 : index
    %c0_0 = arith.constant 0 : index
    %c0_1 = arith.constant 0 : index
    %0 = vector.load %arg0[%c0, %c0_0, %c0_1] : memref<2x4x16xf32, #tpu.memory_space<vmem>>, vector<1x4x16xf32>
    %1 = vector.shape_cast %0 : vector<1x4x16xf32> to vector<4x16xf32>
    %c1 = arith.constant 1 : index
    %c0_2 = arith.constant 0 : index
    %c0_3 = arith.constant 0 : index
    %2 = vector.load %arg0[%c1, %c0_2, %c0_3] : memref<2x4x16xf32, #tpu.memory_space<vmem>>, vector<1x4x16xf32>
    %3 = vector.shape_cast %2 : vector<1x4x16xf32> to vector<4x16xf32>
    %4 = tpu.concatenate %1, %3 in 1 : vector<4x16xf32>, vector<4x16xf32> -> vector<4x32xf32>
    %5 = arith.mulf %4, %4 : vector<4x32xf32>
    %6 = arith.mulf %4, %5 : vector<4x32xf32>
    %cst = arith.constant 4.471500e-02 : f32
    %7 = vector.broadcast %cst : f32 to vector<4x32xf32>
    %8 = arith.mulf %7, %6 : vector<4x32xf32>
    %9 = arith.addf %4, %8 : vector<4x32xf32>
    %cst_4 = arith.constant 0.797884583 : f32
    %10 = vector.broadcast %cst_4 : f32 to vector<4x32xf32>
    %11 = arith.mulf %10, %9 : vector<4x32xf32>
    %12 = math.tanh %11 : vector<4x32xf32>
    %cst_5 = arith.constant 1.000000e+00 : f32
    %13 = vector.broadcast %cst_5 : f32 to vector<4x32xf32>
    %14 = arith.addf %13, %12 : vector<4x32xf32>
    %cst_6 = arith.constant 5.000000e-01 : f32
    %15 = vector.broadcast %cst_6 : f32 to vector<4x32xf32>
    %16 = arith.mulf %15, %14 : vector<4x32xf32>
    %17 = arith.mulf %4, %16 : vector<4x32xf32>
    %18 = tpu.iota {dimensions = array<i32: 1>} : vector<4x32xi32>
    %c16_i32 = arith.constant 16 : i32
    %c0_i32 = arith.constant 0 : i32
    %19 = arith.cmpi eq, %c16_i32, %c0_i32 : i32
    %c1_i32 = arith.constant 1 : i32
    %20 = arith.select %19, %c1_i32, %c16_i32 : i32
    %21 = vector.broadcast %20 : i32 to vector<4x32xi32>
    %22 = arith.remsi %18, %21 : vector<4x32xi32>
    %c0_i32_7 = arith.constant 0 : i32
    %23 = vector.broadcast %c0_i32_7 : i32 to vector<4x32xi32>
    %24 = arith.cmpi ne, %22, %23 : vector<4x32xi32>
    %c0_i32_8 = arith.constant 0 : i32
    %25 = vector.broadcast %c0_i32_8 : i32 to vector<4x32xi32>
    %26 = arith.cmpi slt, %22, %25 : vector<4x32xi32>
    %c0_i32_9 = arith.constant 0 : i32
    %27 = arith.cmpi slt, %20, %c0_i32_9 : i32
    %28 = vector.broadcast %27 : i1 to vector<4x32xi1>
    %29 = vector.broadcast %28 : vector<4x32xi1> to vector<4x32xi1>
    %30 = arith.xori %26, %29 : vector<4x32xi1>
    %31 = arith.andi %30, %24 : vector<4x32xi1>
    %32 = vector.broadcast %20 : i32 to vector<4x32xi32>
    %33 = arith.addi %22, %32 : vector<4x32xi32>
    %34 = arith.select %31, %33, %22 : vector<4x32xi1>, vector<4x32xi32>
    %c0_i32_10 = arith.constant 0 : i32
    %35 = vector.broadcast %c0_i32_10 : i32 to vector<4x32xi32>
    %36 = arith.cmpi eq, %34, %35 : vector<4x32xi32>
    %37 = vector.extract_strided_slice %17 {offsets = [0, 31], sizes = [4, 1], strides = [1, 1]} : vector<4x32xf32> to vector<4x1xf32>
    %38 = vector.extract_strided_slice %17 {offsets = [0, 0], sizes = [4, 31], strides = [1, 1]} : vector<4x32xf32> to vector<4x31xf32>
    %39 = tpu.concatenate %37, %38 in 1 : vector<4x1xf32>, vector<4x31xf32> -> vector<4x32xf32>
    %cst_11 = arith.constant 0.000000e+00 : f32
    %40 = vector.broadcast %cst_11 : f32 to vector<4x32xf32>
    %41 = arith.select %36, %40, %39 : vector<4x32xi1>, vector<4x32xf32>
    %c15_i32 = arith.constant 15 : i32
    %42 = vector.broadcast %c15_i32 : i32 to vector<4x32xi32>
    %43 = arith.cmpi eq, %34, %42 : vector<4x32xi32>
    %44 = vector.extract_strided_slice %17 {offsets = [0, 1], sizes = [4, 31], strides = [1, 1]} : vector<4x32xf32> to vector<4x31xf32>
    %45 = vector.extract_strided_slice %17 {offsets = [0, 0], sizes = [4, 1], strides = [1, 1]} : vector<4x32xf32> to vector<4x1xf32>
    %46 = tpu.concatenate %44, %45 in 1 : vector<4x31xf32>, vector<4x1xf32> -> vector<4x32xf32>
    %cst_12 = arith.constant 0.000000e+00 : f32
    %47 = vector.broadcast %cst_12 : f32 to vector<4x32xf32>
    %48 = arith.select %43, %47, %46 : vector<4x32xi1>, vector<4x32xf32>
    %49 = tpu.concatenate %41, %17, %48 in 0 : vector<4x32xf32>, vector<4x32xf32>, vector<4x32xf32> -> vector<12x32xf32>
    %c0_13 = arith.constant 0 : index
    %c0_14 = arith.constant 0 : index
    %50 = vector.load %arg1[%c0_13, %c0_14] : memref<8x14xf32, #tpu.memory_space<vmem>>, vector<8x14xf32>
    %51 = vector.extract_strided_slice %50 {offsets = [0, 0], sizes = [8, 12], strides = [1, 1]} : vector<8x14xf32> to vector<8x12xf32>
    %52 = vector.extract_strided_slice %50 {offsets = [0, 12], sizes = [8, 1], strides = [1, 1]} : vector<8x14xf32> to vector<8x1xf32>
    %53 = vector.extract_strided_slice %50 {offsets = [0, 13], sizes = [8, 1], strides = [1, 1]} : vector<8x14xf32> to vector<8x1xf32>
    %cst_15 = arith.constant dense<0.000000e+00> : vector<8x32xf32>
    %54 = tpu.matmul %51, %49, %cst_15 {dimension_numbers = #tpu.dot_dimension_numbers<[1], [0], [0], [1], [0, 0, 1, 1], [], []>, precision = #tpu.contract_precision<fp32>} : vector<8x12xf32>, vector<12x32xf32>, vector<8x32xf32> -> vector<8x32xf32>
    %55 = arith.mulf %54, %54 : vector<8x32xf32>
    %56 = tpu.concatenate %54, %55 in 0 : vector<8x32xf32>, vector<8x32xf32> -> vector<16x32xf32>
    %cst_16 = arith.constant dense<0.000000e+00> : vector<16xf32>
    %57 = vector.multi_reduction <add>, %56, %cst_16 [1] : vector<16x32xf32> to vector<16xf32>
    %58 = vector.shape_cast %57 : vector<16xf32> to vector<16x1xf32>
    %cst_17 = arith.constant 3.125000e-02 : f32
    %59 = vector.broadcast %cst_17 : f32 to vector<16x1xf32>
    %60 = arith.mulf %58, %59 : vector<16x1xf32>
    %61 = vector.extract_strided_slice %60 {offsets = [0, 0], sizes = [8, 1], strides = [1, 1]} : vector<16x1xf32> to vector<8x1xf32>
    %62 = vector.extract_strided_slice %60 {offsets = [8, 0], sizes = [8, 1], strides = [1, 1]} : vector<16x1xf32> to vector<8x1xf32>
    %63 = arith.mulf %61, %61 : vector<8x1xf32>
    %64 = arith.subf %62, %63 : vector<8x1xf32>
    %cst_18 = arith.constant 0.000000e+00 : f32
    %65 = vector.broadcast %cst_18 : f32 to vector<8x1xf32>
    %66 = arith.maximumf %64, %65 : vector<8x1xf32>
    %cst_19 = arith.constant 9.99999974E-6 : f32
    %67 = vector.broadcast %cst_19 : f32 to vector<8x1xf32>
    %68 = arith.addf %66, %67 : vector<8x1xf32>
    %69 = math.rsqrt %68 : vector<8x1xf32>
    %70 = arith.mulf %52, %69 : vector<8x1xf32>
    %71 = arith.mulf %61, %70 : vector<8x1xf32>
    %72 = arith.subf %53, %71 : vector<8x1xf32>
    %73 = vector.broadcast %70 : vector<8x1xf32> to vector<8x32xf32>
    %74 = arith.mulf %54, %73 : vector<8x32xf32>
    %75 = vector.broadcast %72 : vector<8x1xf32> to vector<8x32xf32>
    %76 = arith.addf %74, %75 : vector<8x32xf32>
    %77 = vector.extract_strided_slice %76 {offsets = [0, 1], sizes = [8, 31], strides = [1, 1]} : vector<8x32xf32> to vector<8x31xf32>
    %78 = vector.extract_strided_slice %76 {offsets = [0, 0], sizes = [8, 1], strides = [1, 1]} : vector<8x32xf32> to vector<8x1xf32>
    %79 = tpu.concatenate %77, %78 in 1 : vector<8x31xf32>, vector<8x1xf32> -> vector<8x32xf32>
    %80 = arith.maximumf %76, %79 : vector<8x32xf32>
    %81 = tpu.iota {dimensions = array<i32: 0>} : vector<32x16xi32>
    %82 = tpu.iota {dimensions = array<i32: 1>} : vector<32x16xi32>
    %c2_i32 = arith.constant 2 : i32
    %83 = vector.broadcast %c2_i32 : i32 to vector<32x16xi32>
    %84 = arith.muli %83, %82 : vector<32x16xi32>
    %85 = arith.cmpi eq, %81, %84 : vector<32x16xi32>
    %86 = arith.extui %85 : vector<32x16xi1> to vector<32x16xi32>
    %87 = arith.sitofp %86 : vector<32x16xi32> to vector<32x16xf32>
    %cst_20 = arith.constant dense<0.000000e+00> : vector<8x16xf32>
    %88 = tpu.matmul %80, %87, %cst_20 {dimension_numbers = #tpu.dot_dimension_numbers<[1], [0], [0], [1], [0, 0, 1, 1], [], []>, precision = #tpu.contract_precision<fp32>} : vector<8x32xf32>, vector<32x16xf32>, vector<8x16xf32> -> vector<8x16xf32>
    %89 = vector.extract_strided_slice %88 {offsets = [0, 0], sizes = [8, 8], strides = [1, 1]} : vector<8x16xf32> to vector<8x8xf32>
    %c0_21 = arith.constant 0 : index
    %c0_22 = arith.constant 0 : index
    %c0_23 = arith.constant 0 : index
    %90 = vector.load %arg2[%c0_21, %c0_22, %c0_23] : memref<2x8x8xf32, #tpu.memory_space<vmem>>, vector<1x8x8xf32>
    %91 = vector.shape_cast %90 : vector<1x8x8xf32> to vector<8x8xf32>
    %92 = vector.shape_cast %89 : vector<8x8xf32> to vector<1x8x8xf32>
    tpu.vector_store %arg2[%c0_21, %c0_22, %c0_23], %92 {strides = array<i32>} : memref<2x8x8xf32, #tpu.memory_space<vmem>>, vector<1x8x8xf32>,
    %93 = vector.extract_strided_slice %88 {offsets = [0, 8], sizes = [8, 8], strides = [1, 1]} : vector<8x16xf32> to vector<8x8xf32>
    %c1_24 = arith.constant 1 : index
    %c0_25 = arith.constant 0 : index
    %c0_26 = arith.constant 0 : index
    %94 = vector.load %arg2[%c1_24, %c0_25, %c0_26] : memref<2x8x8xf32, #tpu.memory_space<vmem>>, vector<1x8x8xf32>
    %95 = vector.shape_cast %94 : vector<1x8x8xf32> to vector<8x8xf32>
    %96 = vector.shape_cast %93 : vector<8x8xf32> to vector<1x8x8xf32>
    tpu.vector_store %arg2[%c1_24, %c0_25, %c0_26], %96 {strides = array<i32>} : memref<2x8x8xf32, #tpu.memory_space<vmem>>, vector<1x8x8xf32>,
    return
  }
}

</mosaic_0001>

<bundles_post_ra>
// kernel: conv_block.1
= control target key start
LH: loop header
LB: loop body
LE: loop exit
PB: predicated region body
PF: predicated region fallthrough
CT: control target
= control target key end

     0   :  { %7 = vsyncpa [#allocation3], 0  ;;  %s1666_s0 = inlined_call_operand.hbm [shape: f32[2,4,16], index: 0, kind: input, shape index: {}]   ;;  %s1667_s1 = inlined_call_operand.hbm [shape: f32[8,14], index: 1, kind: input, shape index: {}]   ;;  %s1668_s2 = inlined_call_operand.hbm [shape: f32[2,8,8], index: 2, kind: output, shape index: {}]  }
   0x1   :  { %8 = vsyncpa [#allocation6], 0 }
   0x2   :  { %9 = vsyncpa [#allocation4], 0  ;;  %s1480_s9 = smov [#allocation2]   ;;  %s1408_s13 = scalar_lea.hbm %s1666_s0, 128 }
   0x3   :  { %s15_s10 = sshll.u32 %s1480_s9, 4  ;;  %p1409_p0 = scmp.ne.s32.totalorder %s1666_s0, %s1408_s13  ;;  %s16_s10 = int_to_ptr.vmem [resolvable:$true] %s15_s10 }
   0x4   :  { %p1412_p1 = scmp.lt.u32.totalorder %s1408_s13, %s1666_s0 }
   0x6   :  { %p1414_p2 = pnand %p1412_p1, %p1409_p0 }
   0x8   :  { %1417 = shalt.err (!%p1414_p2)
}
   0x9   :  { %s1418_s18 = scalar_lea.vmem %s16_s10, 128  ;;  %p1423_p4 = scmp.lt.s32.totalorder %s16_s10, %s16_s10 }
   0xa   :  { %p1419_p3 = scmp.ne.s32.totalorder %s16_s10, %s1418_s18  ;;  %p1424_p5 = scmp.lt.s32.totalorder %s1418_s18, %s1418_s18 }
   0xc   :  { %p1425_p6 = por %p1424_p5, %p1423_p4 }
   0xe   :  { %p1426_p7 = pnand %p1425_p6, %p1419_p3 }
  0x10   :  { %1429 = shalt.err (!%p1426_p7)
}
  0x11   :  { %s1481_s19 = smov 64   ;;  %s1482_s20 = smov 4  }
  0x12   :  { %21 = dma.hbm_to_vmem [thread:$0]  %s1666_s0, 128, %s16_s10, [#allocation3], %s1481_s19, %s1481_s19, %s1482_s20  }
  0x13   :  { %s1483_s23 = smov [#allocation5]   ;;  %s1430_s27 = scalar_lea.hbm %s1667_s1, 128 }
  0x14   :  { %s28_s24 = sshll.u32 %s1483_s23, 4  ;;  %p1431_p8 = scmp.ne.s32.totalorder %s1667_s1, %s1430_s27  ;;  %s29_s24 = int_to_ptr.vmem [resolvable:$true] %s28_s24 }
  0x15   :  { %p1434_p9 = scmp.lt.u32.totalorder %s1430_s27, %s1667_s1 }
  0x17   :  { %p1436_p10 = pnand %p1434_p9, %p1431_p8 }
  0x19   :  { %1439 = shalt.err (!%p1436_p10)
}
  0x1a   :  { %s1440_s4 = scalar_lea.vmem %s29_s24, 128  ;;  %p1445_p12 = scmp.lt.s32.totalorder %s29_s24, %s29_s24 }
  0x1b   :  { %p1441_p11 = scmp.ne.s32.totalorder %s29_s24, %s1440_s4  ;;  %p1446_p13 = scmp.lt.s32.totalorder %s1440_s4, %s1440_s4 }
  0x1d   :  { %p1447_p0 = por %p1446_p13, %p1445_p12 }
  0x1f   :  { %p1448_p1 = pnand %p1447_p0, %p1441_p11 }
  0x21   :  { %1451 = shalt.err (!%p1448_p1)
}
  0x22   :  { %31 = dma.hbm_to_vmem [thread:$0]  %s1667_s1, 128, %s29_s24, [#allocation6]  }
  0x23   :  { %1474 = dma.done.wait [#allocation3], 128  }
  0x24   :  { %1475 = vsyncadd [#allocation3], 4294967168 }
  0x25   :  { %1476 = dma.done.wait [#allocation6], 128  }
  0x26   :  { %1477 = vsyncadd [#allocation6], 4294967168  ;;  %v40_v0 = vld [vmem:[#allocation2 + $0x4] sm:$0xf]  ;;  %s1484_s6 = smov 16   ;;  %vm45_vm0 = vcmask 130048   ;;  %v56_v15 = vlaneseq }
  0x27   :  { %42 = vrot.lane.b32.xlu0 %v40_v0, %s1484_s6  ;;  %v38_v1 = vld [vmem:[#allocation2] sm:$0xf]  ;;  %v1485_v12 = vmov 0.0|0.0   ;;  %s1486_s1 = smov 1   ;;  %s1487_s7 = smov 97   ;;  %vm1488_vm1 = vmmov 0  }
  0x28   :  { %1309 = vmatprep.subr.bf16.mxu0 %v1485_v12  ;;  %1333 = vmatprep.subr.bf16.mxu1 %v1485_v12  ;;  %v1489_v14 = vmov 0.0   ;;  %s1490_s8 = smov 127   ;;  %s1491_s9 = smov 31   ;;  %v1547_v16 = vld [vmem:[#allocation5] sm:$0xff]  ;;  %vm96_vm2 = vcmask 97280   ;;  %v1550_v17 = vand.u32 127, %v56_v15 }
  0x29   :  { %1205 = vmatprep.mubr.msk.f32.mxu0 %vm1488_vm1, %v1489_v14  ;;  %1262 = vmatprep.mubr.msk.f32.mxu1 %vm1488_vm1, %v1489_v14  ;;  %v98_v18 = vsel %vm96_vm2, %v1547_v16, 0  ;;  %vm78_vm3 = vcmask 7168   ;;  %vm93_vm5 = vcmask 1043456   ;;  %vm88_vm6 = vcmask 252928   ;;  %s1495_s10 = smov 120   ;;  %s1496_s11 = smov [#allocation7]  }
  0x2a   :  { %v62_v19 = vand.u32 15, %v1550_v17  ;;  %v170_v20 = vand.u32 4294901760, %v98_v18  ;;  %vm563_vm8 = vcmask 261120   ;;  %v1492_v55 = vmov 12   ;;  %s1124_s12 = sshll.u32 %s1496_s11, 4  ;;  %s1125_s12 = int_to_ptr.vmem [resolvable:$true] %s1124_s12 }
  0x2b   :  { %1401 = vset.pattern.permute.xlu1 %v1492_v55  ;;  %v1493_v0 = vmov 13   ;;  %vm1111_vm15 = vcmask 64512   ;;  %s1452_s13 = scalar_lea.vmem %s1125_s12, 256  ;;  %p1457_p3 = scmp.lt.s32.totalorder %s1125_s12, %s1125_s12 }
  0x2c   :  { %vm70_vm4 = vcmp.eq.s32.totalorder %v62_v19, 0  ;;  %v171_v21 = vsub.f32 %v98_v18, %v170_v20  ;;  %vm81_vm7 = vcmp.eq.s32.totalorder %v62_v19, 15  ;;  %1403 = vset.pattern.permute.xlu0 %v1493_v0  ;;  %p1453_p2 = scmp.ne.s32.totalorder %s1125_s12, %s1452_s13  ;;  %p1458_p4 = scmp.lt.s32.totalorder %s1452_s13, %s1452_s13 }
  0x2e   :  { %v172_v28 = vand.u32 4294901760, %v171_v21  ;;  %p1459_p5 = por %p1458_p4, %p1457_p3 }
  0x30   :  { %v173_v36 = vsub.f32 %v171_v21, %v172_v28  ;;  %p1460_p6 = pnand %p1459_p5, %p1453_p2 }
  0x32   :  { %v174_v41 = vand.u32 4294901760, %v173_v36 }
  0x99   :  { %v43_v2 = vpop.permute.xlu0 %42 }
  0x9a   :  { %v46_v3 = vsel %vm45_vm0, %v38_v1, %v43_v2 }
  0x9b   :  { %v47_v4 = vmul.f32 %v46_v3, %v46_v3 }
  0x9d   :  { %v48_v5 = vmul.f32 %v47_v4, %v46_v3 }
  0x9f   :  { %v49_v6 = vmul.f32 0.044715, %v48_v5  ;;  %v606_v5 = vshrl.u32 %v56_v15, 7 }
  0xa1   :  { %v50_v7 = vadd.f32 %v49_v6, %v46_v3  ;;  %v610_v6 = vmul.u32 2, %v1550_v17 }
  0xa3   :  { %v51_v8 = vmul.f32 0.7978846, %v50_v7  ;;  %vm611_vm9 = vcmp.eq.s32.totalorder %v606_v5, %v610_v6 }
  0xa5   :  { %1404 = vtanh.f32 %v51_v8  ;;  %v607_v8 = vadd.s32 8, %v606_v5 }
  0xa7   :  { %vm612_vm10 = vcmp.eq.s32.totalorder %v607_v8, %v610_v6 }
  0xa8   :  { %vm1607_vm13 = vmpackc.low %vm612_vm10, %vm611_vm9 }
  0xaf   :  { %v1405_v9 = vpop.eup %1404 }
  0xb0   :  { %v53_v10 = vadd.f32 1.0, %v1405_v9  ;;  %v1137_v9 = vsel %vm611_vm9, 1.0, %v1489_v14 }
  0xb2   :  { %v54_v11 = vmul.f32 0.5, %v53_v10  ;;  %v1587_v10 = vsub.f32 %v1137_v9, %v1137_v9 }
  0xb4   :  { %v55_v13 = vmul.f32 %v54_v11, %v46_v3  ;;  %v1138_v11 = vsel %vm612_vm10, 1.0, %v1489_v14 }
  0xb5   :  { %v1592_v18 = vsub.f32 %v1138_v11, %v1138_v11 }
  0xb6   :  { %75 = vrot.lane.b32.xlu1 %v55_v13, %s1486_s1  ;;  %72 = vrot.lane.b32.xlu0 %v55_v13, %s1487_s7  ;;  %v91_v25 = vrot.slane %v55_v13, 4 }
  0xba   :  { %82 = vrot.lane.b32.xlu1 %v55_v13, %s1490_s8  ;;  %85 = vrot.lane.b32.xlu0 %v55_v13, %s1491_s9  ;;  %v708_v13 = vand.u32 4294901760, %v1587_v10 }
  0xbc   :  { %v709_v15 = vsub.f32 %v1587_v10, %v708_v13 }
  0xbe   :  { %v710_v17 = vand.u32 4294901760, %v709_v15 }
 0x128   :  { %v76_v22 = vpop.permute.xlu1 %75  ;;  %v73_v23 = vpop.permute.xlu0 %72 }
 0x129   :  { %v79_v24 = vsel %vm78_vm3, %v73_v23, %v76_v22  ;;  %v608_v22 = vadd.s32 16, %v606_v5  ;;  %v609_v23 = vadd.s32 24, %v606_v5 }
 0x12a   :  { %v80_v26 = vsel %vm70_vm4, 0.0, %v79_v24 }
 0x12b   :  { %v94_v27 = vsel %vm93_vm5, %v80_v26, %v91_v25  ;;  %vm613_vm11 = vcmp.eq.s32.totalorder %v608_v22, %v610_v6  ;;  %vm614_vm12 = vcmp.eq.s32.totalorder %v609_v23, %v610_v6 }
 0x12c   :  { %v83_v29 = vpop.permute.xlu1 %82  ;;  %v86_v30 = vpop.permute.xlu0 %85  ;;  %v104_v31 = vand.u32 4294901760, %v94_v27  ;;  %v1139_v24 = vsel %vm613_vm11, 1.0, %v1489_v14  ;;  %v1140_v25 = vsel %vm614_vm12, 1.0, %v1489_v14  ;;  %vm1616_vm14 = vmpackc.low %vm614_vm12, %vm613_vm11 }
 0x12d   :  { %v89_v32 = vsel %vm88_vm6, %v83_v29, %v86_v30  ;;  %v721_v26 = vsub.f32 %v1139_v24, %v1139_v24 }
 0x12e   :  { %v90_v33 = vsel %vm81_vm7, 0.0, %v89_v32  ;;  %v182_v34 = vsub.f32 %v94_v27, %v104_v31  ;;  %v728_v27 = vsub.f32 %v1140_v25, %v1140_v25 }
 0x12f   :  { %v101_v35 = vsel %vm93_vm5, %v90_v33, 0 }
 0x130   :  { %v107_v37 = vand.u32 4294901760, %v101_v35  ;;  %v183_v38 = vand.u32 4294901760, %v182_v34  ;;  %v729_v29 = vand.u32 4294901760, %v728_v27 }
 0x132   :  { %v189_v39 = vsub.f32 %v101_v35, %v107_v37  ;;  %v1310_v40 = vpack.c.bf16 %v107_v37, %v104_v31  ;;  %v184_v43 = vsub.f32 %v182_v34, %v183_v38  ;;  %v730_v31 = vsub.f32 %v728_v27, %v729_v29 }
 0x133   :  { %v1494_v37 = vmov 1.0|1.0  }
 0x134   :  { %v190_v42 = vand.u32 4294901760, %v189_v39  ;;  %1311 = vmatpush3.bf16.msra.mxu0 %v1310_v40  ;;  %v185_v45 = vand.u32 4294901760, %v184_v43  ;;  %v1316_v48 = vpack.c.bf16 %v189_v39, %v182_v34  ;;  %v731_v33 = vand.u32 4294901760, %v730_v31 }
 0x135   :  { %1312 = vmatprep.subr.bf16.mxu0 %v1485_v12 }
 0x136   :  { %v191_v44 = vsub.f32 %v189_v39, %v190_v42  ;;  %v1322_v49 = vpack.c.bf16 %v190_v42, %v183_v38  ;;  %v1343_v39 = vpack.c.bf16 %v728_v27, %v721_v26 }
 0x137   :  { %1206 = vmatmul.mubr.f32.vlgmr.msra.gmra.mrb[0].mxu0 %v174_v41 }
 0x138   :  { %v192_v46 = vand.u32 4294901760, %v191_v44  ;;  %1212 = vmatprep.mubr.msk.f32.mxu0 %vm1488_vm1, %v1489_v14 }
 0x13a   :  { %v1313_v47 = vpack.c.bf16 %v192_v46, %v185_v45 }
 0x13c   :  { %1314 = vmatpush3.bf16.msra.mxu0 %v1313_v47 }
 0x13d   :  { %1315 = vmatprep.subr.bf16.mxu0 %v1485_v12 }
 0x13f   :  { %1213 = vmatmul.mubr.f32.vlgmr.msra.gmra.mrb[0].mxu0 %v170_v20 }
 0x140   :  { %1317 = vmatpush3.bf16.msra.mxu0 %v1316_v48  ;;  %1219 = vmatprep.mubr.msk.f32.mxu0 %vm1488_vm1, %v1489_v14 }
 0x141   :  { %1318 = vmatprep.subr.bf16.mxu0 %v1485_v12 }
 0x147   :  { %1220 = vmatmul.mubr.f32.vlgmr.msra.gmra.mrb[0].mxu0 %v171_v21 }
 0x148   :  { %1320 = vmatpush3.bf16.msra.mxu0 %v1310_v40  ;;  %1226 = vmatprep.mubr.msk.f32.mxu0 %vm1488_vm1, %v1489_v14 }
 0x149   :  { %1321 = vmatprep.subr.bf16.mxu0 %v1485_v12 }
 0x14f   :  { %1227 = vmatmul.mubr.f32.vlgmr.msra.gmra.mrb[0].mxu0 %v172_v28  ;;  %v722_v28 = vand.u32 4294901760, %v721_v26 }
 0x150   :  { %1323 = vmatpush3.bf16.msra.mxu0 %v1322_v49  ;;  %1233 = vmatprep.mubr.msk.f32.mxu0 %vm1488_vm1, %v1489_v14  ;;  %v1340_v49 = vpack.c.bf16 %v1592_v18, %v1587_v10 }
 0x151   :  { %1324 = vmatprep.subr.bf16.mxu0 %v1485_v12  ;;  %v723_v30 = vsub.f32 %v721_v26, %v722_v28  ;;  %v1355_v43 = vpack.c.bf16 %v729_v29, %v722_v28 }
 0x153   :  { %v724_v32 = vand.u32 4294901760, %v723_v30 }
 0x155   :  { %v1337_v34 = vpack.c.bf16 %v731_v33, %v724_v32 }
 0x157   :  { %1234 = vmatmul.mubr.f32.vlgmr.msra.gmra.mrb[0].mxu0 %v170_v20 }
 0x158   :  { %1326 = vmatpush3.bf16.msra.mxu0 %v1310_v40  ;;  %1240 = vmatprep.mubr.msk.f32.mxu0 %vm1488_vm1, %v1489_v14 }
 0x159   :  { %1327 = vmatprep.subr.bf16.mxu0 %v1485_v12 }
 0x15f   :  { %1241 = vmatmul.mubr.f32.vlgmr.msra.gmra.mrb[0].mxu0 %v170_v20 }
 0x160   :  { %1251 = vmatprep.mubr.msk.f32.mxu0 %vm1488_vm1, %v1489_v14  ;;  %1329 = vmatpush3.bf16.msk.msra.mxu0 %vm1607_vm13, %v1494_v37 }
 0x161   :  { %1330 = vmatprep.subr.bf16.mxu0 %v1485_v12 }
 0x164   :  { %1332 = vmatpush3.bf16.msk.msra.mxu0 %vm1616_vm14, %v1494_v37 }
 0x232   :  { %v1573_v50 = vpop.f32.mrb[0].mxu0 }
 0x233   :  { %v1242_v51 = vpop.f32.mrb[1].mxu0  ;;  %v564_v52 = vsel %vm563_vm8, %v1573_v50, 0.0  ;;  %v562_v53 = vmul.f32 %v1573_v50, %v1573_v50 }
 0x234   :  { %565 = vadd.xlane.f32.xlu1 %v564_v52 }
 0x235   :  { %v567_v54 = vsel %vm563_vm8, %v562_v53, 0.0 }
 0x236   :  { %568 = vadd.xlane.f32.xlu0 %v567_v54 }
 0x2c1   :  { %v566_v56 = vpop.xlane.xlu1 %565 }
 0x2c2   :  { %v570_v57 = vmul.f32 0.03125, %v566_v56 }
 0x2c3   :  { %v569_v58 = vpop.xlane.xlu0 %568 }
 0x2c4   :  { %v572_v59 = vmul.f32 %v570_v57, %v570_v57  ;;  %v571_v60 = vmul.f32 0.03125, %v569_v58 }
 0x2c6   :  { %v573_v61 = vsub.f32 %v571_v60, %v572_v59 }
 0x2c8   :  { %v574_v62 = vmax.f32 %v573_v61, 0.0 }
 0x2ca   :  { %v575_v63 = vadd.f32 1e-05, %v574_v62 }
 0x2cc   :  { %1406 = vrsqrt.f32 %v575_v63 }
 0x2d6   :  { %v1407_v1 = vpop.eup %1406 }
 0x2d7   :  { %v577_v2 = vmul.f32 %v1407_v1, %v1547_v16 }
 0x2d9   :  { %586 = vperm.xlu1 %1401, %v577_v2   ;;  %v578_v3 = vmul.f32 %v577_v2, %v570_v57 }
 0x2db   :  { %580 = vrot.lane.b32.xlu0 %v578_v3, %s1486_s1 }
 0x2dd   :  { %1402 = vset.pattern.permute.xlu1 %v1493_v0 }
 0x34d   :  { %v581_v4 = vpop.permute.xlu0 %580 }
 0x34e   :  { %v583_v7 = vsub.f32 %v1547_v16, %v581_v4  ;;  %v715_v16 = vand.u32 4294901760, %v1592_v18 }
 0x350   :  { %592 = vperm.xlu1 %1402, %v583_v7   ;;  %v716_v19 = vsub.f32 %v1592_v18, %v715_v16  ;;  %v1352_v55 = vpack.c.bf16 %v715_v16, %v708_v13 }
 0x352   :  { %v717_v20 = vand.u32 4294901760, %v716_v19 }
 0x354   :  { %v1334_v21 = vpack.c.bf16 %v717_v20, %v710_v17 }
 0x356   :  { %1335 = vmatpush3.bf16.msra.mxu1 %v1334_v21 }
 0x357   :  { %1336 = vmatprep.subr.bf16.mxu1 %v1485_v12 }
 0x358   :  { %v587_v35 = vpop.permute.xlu1 %586 }
 0x359   :  { %v589_v40 = vmul.f32 %v587_v35, %v1573_v50 }
 0x35a   :  { %1338 = vmatpush3.bf16.msra.mxu1 %v1337_v34 }
 0x35b   :  { %1339 = vmatprep.subr.bf16.mxu1 %v1485_v12 }
 0x3cf   :  { %v593_v41 = vpop.permute.xlu1 %592 }
 0x3d0   :  { %v595_v42 = vadd.f32 %v593_v41, %v589_v40 }
 0x3d2   :  { %600 = vrot.lane.b32.xlu1 %v595_v42, %s1491_s9  ;;  %597 = vrot.lane.b32.xlu0 %v595_v42, %s1490_s8 }
 0x444   :  { %v601_v44 = vpop.permute.xlu1 %600  ;;  %v598_v45 = vpop.permute.xlu0 %597 }
 0x445   :  { %v603_v46 = vsel %vm88_vm6, %v598_v45, %v601_v44 }
 0x446   :  { %v604_v47 = vmax.f32 %v595_v42, %v603_v46 }
 0x448   :  { %v624_v48 = vsel %vm563_vm8, %v604_v47, 0 }
 0x449   :  { %v695_v50 = vand.u32 4294901760, %v624_v48 }
 0x44b   :  { %v696_v51 = vsub.f32 %v624_v48, %v695_v50  ;;  %1263 = vmatmul.mubr.f32.vlgmr.msra.gmra.mrb[0].mxu1 %v695_v50 }
 0x44c   :  { %1341 = vmatpush3.bf16.msra.mxu1 %v1340_v49  ;;  %1273 = vmatprep.mubr.msk.f32.mxu1 %vm1488_vm1, %v1489_v14 }
 0x44d   :  { %1342 = vmatprep.subr.bf16.mxu1 %v1485_v12  ;;  %v697_v52 = vand.u32 4294901760, %v696_v51 }
 0x44f   :  { %v698_v53 = vsub.f32 %v696_v51, %v697_v52 }
 0x450   :  { %1344 = vmatpush3.bf16.msra.mxu1 %v1343_v39 }
 0x451   :  { %v699_v54 = vand.u32 4294901760, %v698_v53  ;;  %1345 = vmatprep.subr.bf16.mxu1 %v1485_v12 }
 0x453   :  { %1252 = vmatmul.mubr.f32.vlgmr.msra.gmra.mrb[2].mxu0 %v699_v54  ;;  %1274 = vmatmul.mubr.f32.vlgmr.msra.gmra.mrb[0].mxu1 %v696_v51 }
 0x454   :  { %1347 = vmatpush3.bf16.msk.msra.mxu1 %vm1607_vm13, %v1494_v37  ;;  %1284 = vmatprep.mubr.msk.f32.mxu1 %vm1488_vm1, %v1489_v14 }
 0x455   :  { %1348 = vmatprep.subr.bf16.mxu1 %v1485_v12 }
 0x458   :  { %1350 = vmatpush3.bf16.msk.msra.mxu1 %vm1616_vm14, %v1494_v37 }
 0x459   :  { %1351 = vmatprep.subr.bf16.mxu1 %v1485_v12 }
 0x45b   :  { %1285 = vmatmul.mubr.f32.vlgmr.msra.gmra.mrb[0].mxu1 %v697_v52 }
 0x45c   :  { %1353 = vmatpush3.bf16.msra.mxu1 %v1352_v55  ;;  %1295 = vmatprep.mubr.msk.f32.mxu1 %vm1488_vm1, %v1489_v14 }
 0x45d   :  { %1354 = vmatprep.subr.bf16.mxu1 %v1485_v12 }
 0x460   :  { %1356 = vmatpush3.bf16.msra.mxu1 %v1355_v43 }
 0x461   :  { %1357 = vmatprep.subr.bf16.mxu1 %v1485_v12 }
 0x463   :  { %1296 = vmatmul.mubr.f32.vlgmr.msra.gmra.mrb[0].mxu1 %v695_v50 }
 0x464   :  { %1359 = vmatpush3.bf16.msk.msra.mxu1 %vm1607_vm13, %v1494_v37  ;;  %1306 = vmatprep.mubr.msk.f32.mxu1 %vm1488_vm1, %v1489_v14 }
 0x465   :  { %1360 = vmatprep.subr.bf16.mxu1 %v1485_v12 }
 0x468   :  { %1362 = vmatpush3.bf16.msk.msra.mxu1 %vm1616_vm14, %v1494_v37 }
 0x46b   :  { %1307 = vmatmul.mubr.f32.vlgmr.msra.gmra.mrb[0].mxu1 %v695_v50 }
 0x526   :  { %v701_v56 = vpop.f32.mrb[2].mxu0 }
 0x527   :  { %v1253_v57 = vpop.f32.mrb[3].mxu0 }
 0x53e   :  { %v1107_v58 = vpop.f32.mrb[0].mxu1 }
 0x53f   :  { %v1363_v59 = vadd.f32 %v1107_v58, %v701_v56  ;;  %v1308_v60 = vpop.f32.mrb[1].mxu1 }
 0x541   :  { %1114 = vrot.lane.b32.xlu0 %v1363_v59, %s1495_s10  ;;  %1112 = vst.msk [vmem:[#allocation7] sm:$0xff] %vm1111_vm15, %v1363_v59 }
 0x5b3   :  { %v1115_v61 = vpop.permute.xlu0 %1114 }
 0x5b4   :  { %1118 = vst.msk [vmem:[#allocation7 + $0x8] sm:$0xff] %vm1111_vm15, %v1115_v61 }
 0x5b5   :  { %1463 = shalt.err (!%p1460_p6)
}
 0x5b6   :  { %s1464_s16 = scalar_lea.hbm %s1668_s2, 256 }
 0x5b7   :  { %p1465_p7 = scmp.ne.s32.totalorder %s1668_s2, %s1464_s16  ;;  %p1468_p8 = scmp.lt.u32.totalorder %s1464_s16, %s1668_s2 }
 0x5b9   :  { %p1470_p9 = pnand %p1468_p8, %p1465_p7 }
 0x5bb   :  { %1473 = shalt.err (!%p1470_p9)
}
 0x5bc   :  { %s1497_s21 = smov 128   ;;  %s1498_s22 = smov 8  }
 0x5bd   :  { %1130 = dma.vmem_to_hbm [thread:$0]  %s1125_s12, 256, %s1668_s2, [#allocation4], %s1497_s21, %s1497_s21, %s1498_s22  }
 0x5be   :  { %1478 = dma.done.wait [#allocation4], 256  }
 0x5bf   :  { %1479 = vsyncadd [#allocation4], 4294967040 }
 0x5c0   :  { %1134 = vsyncpa [#allocation3], 1 }
 0x5c1   :  { %1135 = vsyncpa [#allocation6], 1 }
 0x5c2   :  { %1136 = vsyncpa [#allocation4], 1 }

</bundles_post_ra>
